<compile_context>
chip_gen: v5e
topology: v5e:2x2
jax: 0.10.0
libtpu: 0.0.40
codegen_flags: <defaults>
</compile_context>

<pallas_src>
import functools

import jax
import jax.numpy as jnp
from jax.experimental import pallas as pl
from jax.experimental.pallas import tpu as pltpu

CHAR_EMBED_SIZE = 50
KERNEL_SIZE = 5
PAD = 1
TILE_WORDS = 256   # max words per grid step


def _round_up(x, m):
    return (x + m - 1) // m * m


def _embed_kernel(x_ref, wconv_ref, bconv_ref, whw_ref, bhw_ref, out_ref):
    """One grid step handles a tile of words.

    x_ref      : (L_pad, tile_n, C)      bf16  zero-padded char embeddings, length-major
    wconv_ref  : (KC_pad=256, F_pad)     bf16  conv weight flattened (j*C + c, f), zero rows past K*C
    bconv_ref  : (1, F_pad)              bf16
    whw_ref    : (F_pad, 2*F_pad)        bf16  [W_proj || W_gate] (in, out)
    bhw_ref    : (1, 2*F_pad)            f32   [b_proj || b_gate]
    out_ref    : (tile_n, F_pad)         f32   word embeddings for this tile
    """
    l_pad, tile_n, c = x_ref.shape
    kc_pad = wconv_ref.shape[0]
    f_pad = out_ref.shape[-1]
    l_out = l_pad - KERNEL_SIZE + 1
    rows = l_out * tile_n

    # Conv1d(k=5, pad=1) as ONE full-depth MXU matmul: lane-concat the K shifted
    # slices (each (l_out*tile_n, C)) along the channel axis, zero-padded to the
    # 256-deep contraction.  tile_n % 8 == 0 so the reshapes are layout views.
    pieces = [x_ref[pl.ds(j, l_out), :, :].reshape(rows, c)
              for j in range(KERNEL_SIZE)]
    pad_w = kc_pad - KERNEL_SIZE * c
    if pad_w > 0:
        pieces.append(jnp.zeros((rows, pad_w), jnp.bfloat16))
    xcat = jnp.concatenate(pieces, axis=-1)                       # (rows, 256) bf16

    acc = jnp.dot(xcat, wconv_ref[...],
                  preferred_element_type=jnp.float32)             # (rows, F_pad) f32

    # bias + ReLU + max-pool over chars in bf16 (f32 kept for MXU accumulation).
    conv = jnp.maximum(acc.astype(jnp.bfloat16) + bconv_ref[...], 0)
    pooled = jnp.max(conv.reshape(l_out, tile_n, f_pad), axis=0)  # (tile_n, F_pad) bf16

    # Highway: fused proj||gate matmul, split at the 128-aligned lane boundary.
    hw = jnp.dot(pooled, whw_ref[...],
                 preferred_element_type=jnp.float32) + bhw_ref[...]
    x_proj = jnp.maximum(hw[:, :f_pad], 0.0)
    x_gate = jax.nn.sigmoid(hw[:, f_pad:])

    out = x_gate * x_proj + (1.0 - x_gate) * pooled.astype(jnp.float32)
    # TODO(synk): nn.Dropout(0.3) in train mode would need pltpu.prng_seed /
    #             pltpu.prng_random_bits masking; treated as eval-mode identity.
    out_ref[...] = out.astype(out_ref.dtype)


@functools.partial(jax.jit, static_argnames=("word_embed_size",))
def model_embeddings_forward(char_idx, params, *, word_embed_size):
    """char_idx: (sentence_length, batch_size, max_word_length) int32
    returns   : (sentence_length, batch_size, word_embed_size) float32
    """
    s_len, b_sz, max_wlen = char_idx.shape
    n_words = s_len * b_sz
    f = word_embed_size
    c = CHAR_EMBED_SIZE
    k = KERNEL_SIZE
    l_pad = max_wlen + 2 * PAD
    f_pad = max(_round_up(f, 128), 128)          # lane-dense output / MXU N
    kc_pad = _round_up(k * c, 128)               # 256: fused conv contraction depth

    # Word-tile selection: big tiles amortize per-step overhead; ensure at least
    # 2 grid steps whenever possible so v7x's two TensorCores both get work.
    tile_n = min(TILE_WORDS, _round_up(n_words, 8))
    if n_words > 8 and _round_up(n_words, tile_n) // tile_n < 2:
        tile_n = _round_up((n_words + 1) // 2, 8)
    n_pad = _round_up(n_words, tile_n)
    grid = (n_pad // tile_n,)

    # --- glue: char-embedding gather in length-major layout (L, N, C), bf16.
    char_emb = params["char_emb"].astype(jnp.bfloat16)
    flat_idx = char_idx.reshape(n_words, max_wlen).T                 # (L, N)
    emb = jnp.take(char_emb, flat_idx, axis=0)                       # (L, N, C) bf16
    emb = jnp.pad(emb, ((PAD, PAD), (0, n_pad - n_words), (0, 0)))   # (L_pad, N_pad, C)

    # --- conv weight: torch (F, C, K) -> (K, C, F) -> flat (K*C, F), padded (256, F_pad)
    w_conv = jnp.transpose(params["conv_w"], (2, 1, 0)).reshape(k * c, f)
    w_conv = jnp.pad(w_conv, ((0, kc_pad - k * c), (0, f_pad - f))).astype(jnp.bfloat16)
    b_conv = jnp.pad(params["conv_b"], (0, f_pad - f)).reshape(1, f_pad).astype(jnp.bfloat16)

    # --- highway: torch Linear (out,in) -> (in,out); fuse [proj || gate].
    w_proj = jnp.pad(params["proj_w"].T, ((0, f_pad - f), (0, f_pad - f)))
    w_gate = jnp.pad(params["gate_w"].T, ((0, f_pad - f), (0, f_pad - f)))
    w_hw = jnp.concatenate([w_proj, w_gate], axis=1).astype(jnp.bfloat16)  # (F_pad, 2F_pad)
    b_hw = jnp.concatenate([jnp.pad(params["proj_b"], (0, f_pad - f)),
                            jnp.pad(params["gate_b"], (0, f_pad - f))],
                           axis=0).reshape(1, 2 * f_pad).astype(jnp.float32)

    out = pl.pallas_call(
        _embed_kernel,
        out_shape=jax.ShapeDtypeStruct((n_pad, f_pad), jnp.float32),
        grid_spec=pltpu.PrefetchScalarGridSpec(
            num_scalar_prefetch=0,
            grid=grid,
            in_specs=[
                pl.BlockSpec((l_pad, tile_n, c), lambda i: (0, i, 0)),
                pl.BlockSpec((kc_pad, f_pad), lambda i: (0, 0)),
                pl.BlockSpec((1, f_pad), lambda i: (0, 0)),
                pl.BlockSpec((f_pad, 2 * f_pad), lambda i: (0, 0)),
                pl.BlockSpec((1, 2 * f_pad), lambda i: (0, 0)),
            ],
            out_specs=pl.BlockSpec((tile_n, f_pad), lambda i: (i, 0)),
        ),
        compiler_params=pltpu.CompilerParams(
            dimension_semantics=("parallel",),
            vmem_limit_bytes=32 * 1024 * 1024,   # safe on v5e/v6e/v7x
        ),
    )(emb, w_conv, b_conv, w_hw, b_hw)

    return out[:n_words, :f].reshape(s_len, b_sz, f)


def init_params(key, vocab_char_size, word_embed_size):
    c, f, k = CHAR_EMBED_SIZE, word_embed_size, KERNEL_SIZE
    keys = jax.random.split(key, 6)
    return {
        "char_emb": jax.random.normal(keys[0], (vocab_char_size, c), jnp.float32) * 0.1,
        "conv_w": jax.random.normal(keys[1], (f, c, k), jnp.float32) * 0.05,
        "conv_b": jax.random.normal(keys[2], (f,), jnp.float32) * 0.01,
        "proj_w": jax.random.normal(keys[3], (f, f), jnp.float32) * 0.05,
        "proj_b": jnp.zeros((f,), jnp.float32),
        "gate_w": jax.random.normal(keys[4], (f, f), jnp.float32) * 0.05,
        "gate_b": jnp.zeros((f,), jnp.float32),
    }


if __name__ == "__main__":
    key = jax.random.PRNGKey(0)
    sentence_length, batch_size, max_word_length = 8, 2, 12
    vocab_char_size = 96
    word_embed_size = 32

    k_idx, k_par = jax.random.split(key)
    char_idx = jax.random.randint(
        k_idx, (sentence_length, batch_size, max_word_length), 0, vocab_char_size,
        dtype=jnp.int32)
    params = init_params(k_par, vocab_char_size, word_embed_size)

    out = model_embeddings_forward(char_idx, params,
                                   word_embed_size=word_embed_size)
    out = jax.block_until_ready(out)
    assert out.shape == (sentence_length, batch_size, word_embed_size)
    assert out.dtype == jnp.float32
    assert bool(jnp.all(jnp.isfinite(out)))
    print("KERNEL_OK")
</pallas_src>

<mosaic_0001>
module attributes {stable_mosaic.version = 11 : i64} {
  func.func @_embed_kernel(%arg0: i32, %arg1: memref<14x8x50xbf16, #tpu.memory_space<vmem>>, %arg2: memref<256x128xbf16, #tpu.memory_space<vmem>>, %arg3: memref<1x128xbf16, #tpu.memory_space<vmem>>, %arg4: memref<128x256xbf16, #tpu.memory_space<vmem>>, %arg5: memref<1x256xf32, #tpu.memory_space<vmem>>, %arg6: memref<8x128xf32, #tpu.memory_space<vmem>>) attributes {dimension_semantics = [#tpu.dimension_semantics<parallel>], iteration_bounds = array<i64: 2>, scalar_prefetch = 0 : i64, scratch_operands = 0 : i64, tpu.core_type = #tpu.core_type<tc>, window_params = [{transform_indices = @transform_0, window_bounds = array<i64: 14, 8, 50>}, {pipeline_mode = #tpu.pipeline_mode<synchronous>, transform_indices = @transform_1, window_bounds = array<i64: 256, 128>}, {pipeline_mode = #tpu.pipeline_mode<synchronous>, transform_indices = @transform_2, window_bounds = array<i64: 1, 128>}, {pipeline_mode = #tpu.pipeline_mode<synchronous>, transform_indices = @transform_3, window_bounds = array<i64: 128, 256>}, {pipeline_mode = #tpu.pipeline_mode<synchronous>, transform_indices = @transform_4, window_bounds = array<i64: 1, 256>}, {transform_indices = @transform_5, window_bounds = array<i64: 8, 128>}]} {
    %c0 = arith.constant 0 : index
    %c0_0 = arith.constant 0 : index
    %c0_1 = arith.constant 0 : index
    %0 = vector.load %arg1[%c0, %c0_0, %c0_1] : memref<14x8x50xbf16, #tpu.memory_space<vmem>>, vector<10x8x50xbf16>
    %1 = vector.shape_cast %0 : vector<10x8x50xbf16> to vector<80x50xbf16>
    %c1 = arith.constant 1 : index
    %c0_2 = arith.constant 0 : index
    %c0_3 = arith.constant 0 : index
    %2 = vector.load %arg1[%c1, %c0_2, %c0_3] : memref<14x8x50xbf16, #tpu.memory_space<vmem>>, vector<10x8x50xbf16>
    %3 = vector.shape_cast %2 : vector<10x8x50xbf16> to vector<80x50xbf16>
    %c2 = arith.constant 2 : index
    %c0_4 = arith.constant 0 : index
    %c0_5 = arith.constant 0 : index
    %4 = vector.load %arg1[%c2, %c0_4, %c0_5] : memref<14x8x50xbf16, #tpu.memory_space<vmem>>, vector<10x8x50xbf16>
    %5 = vector.shape_cast %4 : vector<10x8x50xbf16> to vector<80x50xbf16>
    %c3 = arith.constant 3 : index
    %c0_6 = arith.constant 0 : index
    %c0_7 = arith.constant 0 : index
    %6 = vector.load %arg1[%c3, %c0_6, %c0_7] : memref<14x8x50xbf16, #tpu.memory_space<vmem>>, vector<10x8x50xbf16>
    %7 = vector.shape_cast %6 : vector<10x8x50xbf16> to vector<80x50xbf16>
    %c4 = arith.constant 4 : index
    %c0_8 = arith.constant 0 : index
    %c0_9 = arith.constant 0 : index
    %8 = vector.load %arg1[%c4, %c0_8, %c0_9] : memref<14x8x50xbf16, #tpu.memory_space<vmem>>, vector<10x8x50xbf16>
    %9 = vector.shape_cast %8 : vector<10x8x50xbf16> to vector<80x50xbf16>
    %cst = arith.constant 0.000000e+00 : bf16
    %10 = vector.broadcast %cst : bf16 to vector<80x6xbf16>
    %11 = tpu.concatenate %1, %3, %5, %7, %9, %10 in 1 : vector<80x50xbf16>, vector<80x50xbf16>, vector<80x50xbf16>, vector<80x50xbf16>, vector<80x50xbf16>, vector<80x6xbf16> -> vector<80x256xbf16>
    %c0_10 = arith.constant 0 : index
    %c0_11 = arith.constant 0 : index
    %12 = vector.load %arg2[%c0_10, %c0_11] : memref<256x128xbf16, #tpu.memory_space<vmem>>, vector<256x128xbf16>
    %cst_12 = arith.constant dense<0.000000e+00> : vector<80x128xf32>
    %13 = tpu.matmul %11, %12, %cst_12 {dimension_numbers = #tpu.dot_dimension_numbers<[1], [0], [0], [1], [0, 0, 1, 1], [], []>} : vector<80x256xbf16>, vector<256x128xbf16>, vector<80x128xf32> -> vector<80x128xf32>
    %14 = arith.truncf %13 : vector<80x128xf32> to vector<80x128xbf16>
    %c0_13 = arith.constant 0 : index
    %c0_14 = arith.constant 0 : index
    %15 = vector.load %arg3[%c0_13, %c0_14] : memref<1x128xbf16, #tpu.memory_space<vmem>>, vector<1x128xbf16>
    %16 = vector.broadcast %15 : vector<1x128xbf16> to vector<80x128xbf16>
    %17 = arith.addf %14, %16 : vector<80x128xbf16>
    %cst_15 = arith.constant 0.000000e+00 : bf16
    %18 = vector.broadcast %cst_15 : bf16 to vector<80x128xbf16>
    %19 = arith.maximumf %17, %18 : vector<80x128xbf16>
    %20 = vector.shape_cast %19 : vector<80x128xbf16> to vector<10x8x128xbf16>
    %cst_16 = arith.constant dense<0xFF80> : vector<8x128xbf16>
    %21 = vector.multi_reduction <maximumf>, %20, %cst_16 [0] : vector<10x8x128xbf16> to vector<8x128xbf16>
    %c0_17 = arith.constant 0 : index
    %c0_18 = arith.constant 0 : index
    %22 = vector.load %arg4[%c0_17, %c0_18] : memref<128x256xbf16, #tpu.memory_space<vmem>>, vector<128x256xbf16>
    %cst_19 = arith.constant dense<0.000000e+00> : vector<8x256xf32>
    %23 = tpu.matmul %21, %22, %cst_19 {dimension_numbers = #tpu.dot_dimension_numbers<[1], [0], [0], [1], [0, 0, 1, 1], [], []>} : vector<8x128xbf16>, vector<128x256xbf16>, vector<8x256xf32> -> vector<8x256xf32>
    %c0_20 = arith.constant 0 : index
    %c0_21 = arith.constant 0 : index
    %24 = vector.load %arg5[%c0_20, %c0_21] : memref<1x256xf32, #tpu.memory_space<vmem>>, vector<1x256xf32>
    %25 = vector.broadcast %24 : vector<1x256xf32> to vector<8x256xf32>
    %26 = arith.addf %23, %25 : vector<8x256xf32>
    %27 = vector.extract_strided_slice %26 {offsets = [0, 0], sizes = [8, 128], strides = [1, 1]} : vector<8x256xf32> to vector<8x128xf32>
    %cst_22 = arith.constant 0.000000e+00 : f32
    %28 = vector.broadcast %cst_22 : f32 to vector<8x128xf32>
    %29 = arith.maximumf %27, %28 : vector<8x128xf32>
    %30 = vector.extract_strided_slice %26 {offsets = [0, 128], sizes = [8, 128], strides = [1, 1]} : vector<8x256xf32> to vector<8x128xf32>
    %31 = arith.negf %30 : vector<8x128xf32>
    %32 = math.exp %31 : vector<8x128xf32>
    %cst_23 = arith.constant 1.000000e+00 : f32
    %33 = vector.broadcast %cst_23 : f32 to vector<8x128xf32>
    %34 = arith.addf %33, %32 : vector<8x128xf32>
    %35 = arith.divf %33, %34 : vector<8x128xf32>
    %36 = arith.mulf %35, %29 : vector<8x128xf32>
    %cst_24 = arith.constant 1.000000e+00 : f32
    %37 = vector.broadcast %cst_24 : f32 to vector<8x128xf32>
    %38 = arith.subf %37, %35 : vector<8x128xf32>
    %39 = arith.extf %21 : vector<8x128xbf16> to vector<8x128xf32>
    %40 = arith.mulf %38, %39 : vector<8x128xf32>
    %41 = arith.addf %36, %40 : vector<8x128xf32>
    %c0_25 = arith.constant 0 : index
    %c0_26 = arith.constant 0 : index
    %42 = vector.load %arg6[%c0_25, %c0_26] : memref<8x128xf32, #tpu.memory_space<vmem>>, vector<8x128xf32>
    tpu.vector_store %arg6[%c0_25, %c0_26], %41 {strides = array<i32>} : memref<8x128xf32, #tpu.memory_space<vmem>>, vector<8x128xf32>,
    return
  }
  func.func @transform_0(%arg0: i32) -> (i32, i32, i32) {
    %c0_i32 = arith.constant 0 : i32
    %c0_i32_0 = arith.constant 0 : i32
    %c0_i32_1 = arith.constant 0 : i32
    return %c0_i32, %arg0, %c0_i32_0 : i32, i32, i32
  }
  func.func @transform_1(%arg0: i32) -> (i32, i32) {
    %c0_i32 = arith.constant 0 : i32
    %c0_i32_0 = arith.constant 0 : i32
    %c0_i32_1 = arith.constant 0 : i32
    return %c0_i32, %c0_i32_0 : i32, i32
  }
  func.func @transform_2(%arg0: i32) -> (i32, i32) {
    %c0_i32 = arith.constant 0 : i32
    %c0_i32_0 = arith.constant 0 : i32
    %c0_i32_1 = arith.constant 0 : i32
    return %c0_i32, %c0_i32_0 : i32, i32
  }
  func.func @transform_3(%arg0: i32) -> (i32, i32) {
    %c0_i32 = arith.constant 0 : i32
    %c0_i32_0 = arith.constant 0 : i32
    %c0_i32_1 = arith.constant 0 : i32
    return %c0_i32, %c0_i32_0 : i32, i32
  }
  func.func @transform_4(%arg0: i32) -> (i32, i32) {
    %c0_i32 = arith.constant 0 : i32
    %c0_i32_0 = arith.constant 0 : i32
    %c0_i32_1 = arith.constant 0 : i32
    return %c0_i32, %c0_i32_0 : i32, i32
  }
  func.func @transform_5(%arg0: i32) -> (i32, i32) {
    %c0_i32 = arith.constant 0 : i32
    %c0_i32_0 = arith.constant 0 : i32
    return %arg0, %c0_i32 : i32, i32
  }
}

</mosaic_0001>

<bundles_post_ra>
// kernel: model_embeddings_forward.1
= control target key start
LH: loop header
LB: loop body
LE: loop exit
PB: predicated region body
PF: predicated region fallthrough
CT: control target
= control target key end

     0   :  { %10 = vsyncpa [#allocation4], 0  ;;  %s1964_s0 = inlined_call_operand.vmem [shape: bf16[14,16,50], index: 0, kind: input, shape index: {}]   ;;  %s1965_s1 = inlined_call_operand.vmem [shape: bf16[256,128], index: 1, kind: input, shape index: {}]   ;;  %s1966_s2 = inlined_call_operand.vmem [shape: bf16[1,128], index: 2, kind: input, shape index: {}]   ;;  %s1967_s3 = inlined_call_operand.vmem [shape: bf16[128,256], index: 3, kind: input, shape index: {}]   ;;  %s1968_s4 = inlined_call_operand.vmem [shape: f32[1,256], index: 4, kind: input, shape index: {}]   ;;  %s1969_s5 = inlined_call_operand.hbm [shape: f32[16,128], index: 5, kind: output, shape index: {}]  }
   0x1   :  { %12 = vsyncpa [#allocation4 + $0x1], 0  ;;  %s1635_s18 = smov 0   ;;  %s1637_s19 = smov 0  }
   0x2   :  { %s1639_s20 = smov 0   ;;  %s1641_s21 = smov 0  }
   0x3 LB: > { %s1130_s22 = sadd.s32 4294967295, %s1599_s21   ;;  %s1131_s23 = sadd.s32 4294967294, %s1599_s21   ;;  %s1599_s21 = sphi %s1641_s21, %s1975_s21   ;;  %s1595_s20 = sphi %s1639_s20, %s1974_s20   ;;  %s1591_s19 = sphi %s1637_s19, %s1973_s19   ;;  %s1587_s18 = sphi %s1635_s18, %s1972_s18  }
   0x4   : > { %s1658_s24 = sadd.s32 1, %s1599_s21   ;;  %s25_s25 = sadd.s32 1, %s1595_s20 }
   0x5   : > { %s22_s26 = ssub.s32 %s1599_s21, %s1658_s24  ;;  %p32_p0 = scmp.ne.s32.totalorder %s1595_s20, %s1591_s19 }
   0x6   : > { %p23_p1 = scmp.eq.s32.totalorder %s22_s26, 0  ;;  %p33_p2 = scmp.eq.s32.totalorder %s1599_s21, 0 }
   0x7   : > { %p146_p3 = scmp.eq.s32.totalorder %s1130_s22, 1  ;;  %p151_p4 = scmp.ne.s32.totalorder %s1591_s19, %s1587_s18 }
   0x8   : > { %s1671_s27 = scalar_select %p23_p1, %s1595_s20, %s25_s25  }
   0x9   : > { %p34_p5 = por %p33_p2, %p32_p0  ;;  %p1673_p6 = por %p146_p3, %p32_p0 }
   0xa   : > { %p152_p7 = scmp.eq.s32.totalorder %s1131_s23, 1  ;;  %p1133_p9 = scmp.ge.s32.totalorder %s1599_s21, 2 }
   0xc   : > { %p1677_p8 = por %p152_p7, %p151_p4  ;;  %180 = sbr.rel (%p1133_p9) target bundleno = 36 (0x24), region = 32 }
  0x11   : > { %183 = sbr.rel (!%p34_p5) target bundleno = 36 (0x24), region = 36  ;;  %s185_s30 = sand.u32 (%p34_p5), 1, %s1595_s20  }
  0x12   : > { %s1134_s6 = sshll.u32 (%p34_p5), %s1599_s21, 2  ;;  %s1488_s7 = smul.u32 (%p34_p5), 56, %s185_s30 }
  0x13   : > { %s189_s10 = scalar_lea.vmem (%p34_p5), %s1964_s0, %s1134_s6 }
  0x14   : > { %v206_v0 = vld [vmem:[%s189_s10] sm:$0xf] (%p34_p5)  ;;  %v208_v1 = vld [vmem:[%s189_s10 + $0x8] sm:$0xf] (%p34_p5)  ;;  %v210_v2 = vld [vmem:[%s189_s10 + $0x10] sm:$0xf] (%p34_p5) }
  0x15   : > { %s187_s11 = scalar_lea.vmem (%p34_p5), [#allocation2], %s1488_s7  ;;  %v212_v3 = vld [vmem:[%s189_s10 + $0x18] sm:$0xf] (%p34_p5)  ;;  %v214_v4 = vld [vmem:[%s189_s10 + $0x20] sm:$0xf] (%p34_p5) }
  0x16   : > { %207 = vst [vmem:[%s187_s11] sm:$0xf] %v206_v0  ;;  %v216_v5 = vld [vmem:[%s189_s10 + $0x28] sm:$0xf]  ;;  %v218_v6 = vld [vmem:[%s189_s10 + $0x30] sm:$0xf] }
  0x17   : > { %209 = vst [vmem:[%s187_s11 + $0x4] sm:$0xf] %v208_v1  ;;  %v220_v7 = vld [vmem:[%s189_s10 + $0x38] sm:$0xf]  ;;  %v222_v8 = vld [vmem:[%s189_s10 + $0x40] sm:$0xf] }
  0x18   : > { %211 = vst [vmem:[%s187_s11 + $0x8] sm:$0xf] %v210_v2  ;;  %v224_v9 = vld [vmem:[%s189_s10 + $0x48] sm:$0xf]  ;;  %v226_v10 = vld [vmem:[%s189_s10 + $0x50] sm:$0xf] }
  0x19   : > { %213 = vst [vmem:[%s187_s11 + $0xc] sm:$0xf] %v212_v3  ;;  %v228_v11 = vld [vmem:[%s189_s10 + $0x58] sm:$0xf]  ;;  %v230_v12 = vld [vmem:[%s189_s10 + $0x60] sm:$0xf] }
  0x1a   : > { %215 = vst [vmem:[%s187_s11 + $0x10] sm:$0xf] %v214_v4  ;;  %v232_v13 = vld [vmem:[%s189_s10 + $0x68] sm:$0xf] }
  0x1b   : > { %217 = vst [vmem:[%s187_s11 + $0x14] sm:$0xf] %v216_v5 }
  0x1c   : > { %219 = vst [vmem:[%s187_s11 + $0x18] sm:$0xf] %v218_v6 }
  0x1d   : > { %221 = vst [vmem:[%s187_s11 + $0x1c] sm:$0xf] %v220_v7 }
  0x1e   : > { %223 = vst [vmem:[%s187_s11 + $0x20] sm:$0xf] %v222_v8 }
  0x1f   : > { %225 = vst [vmem:[%s187_s11 + $0x24] sm:$0xf] %v224_v9 }
  0x20   : > { %227 = vst [vmem:[%s187_s11 + $0x28] sm:$0xf] %v226_v10 }
  0x21   : > { %229 = vst [vmem:[%s187_s11 + $0x2c] sm:$0xf] %v228_v11 }
  0x22   : > { %231 = vst [vmem:[%s187_s11 + $0x30] sm:$0xf] %v230_v12 }
  0x23   : > { %233 = vst [vmem:[%s187_s11 + $0x34] sm:$0xf] %v232_v13 }
  0x24 PF: > { %p1135_p10 = scmp.ge.s32.totalorder %s1599_s21, 1  ;;  %p284_p11 = scmp.lt.s32.totalorder %s1599_s21, 3 }
  0x26   : > { %p285_p12 = pnand %p1135_p10, %p284_p11 }
  0x27   : > { %s1692_s12 = sand.u32 (!%p285_p12), 1, %s1591_s19   ;;  %s1601_s15 = smov (!%p285_p12), 22  }
  0x28   : > { %288 = sbr.rel (%p285_p12) target bundleno = 539 (0x21b), region = 77  ;;  %s1602_s16 = smov (!%p285_p12), 50  }
  0x29   : > { %s1489_s13 = smul.u32 (!%p285_p12), 56, %s1692_s12  ;;  %s1603_s17 = smov (!%p285_p12), 72  }
  0x2a   : > { %s1604_s23 = smov (!%p285_p12), 100   ;;  %s1136_s7 = sshll.u32 (!%p285_p12), %s1692_s12, 3 }
  0x2b   : > { %s1695_s14 = scalar_lea.vmem (!%p285_p12), [#allocation2], %s1489_s13  ;;  %s1412_s8 = sshll.u32 (!%p285_p12), %s1130_s22, 3 }
  0x2c   : > { %s1061_s10 = scalar_lea.hbm (!%p285_p12), %s1969_s5, %s1412_s8  ;;  %s1557_s30 = scalar_lea.hbm (!%p285_p12), %s1969_s5, 16 }
  0x2d   : > { %v1430_v14 = vld [vmem:[%s1695_s14 + $0xc] sm:$0xff]  ;;  %v1420_v15 = vld [vmem:[%s1695_s14 + $0x4] sm:$0xff]  ;;  %v1423_v19 = vld [vmem:[%s1695_s14 + $0x1c] sm:$0xff]  ;;  %vm538_vm0 = vcmask 408576   ;;  %vm570_vm1 = vcmask 179200   ;;  %vm554_vm2 = vcmask 818176  }
  0x2e   : > { %493 = vrot.lane.b32.xlu1 %v1430_v14, %s1601_s15  ;;  %423 = vrot.lane.b32.xlu0 %v1420_v15, %s1602_s16  ;;  %v1421_v16 = vld [vmem:[%s1695_s14 + $0xc] sm:$0xff]  ;;  %v1428_v20 = vld [vmem:[%s1695_s14 + $0x20] sm:$0xff]  ;;  %vm581_vm3 = vcmask 588800   ;;  %vm592_vm4 = vcmask 998400   ;;  %s1065_s22 = sshll.u32 %s1061_s10, 4  ;;  %s1066_s22 = int_to_ptr.hbm [resolvable:$true] %s1065_s22 }
  0x2f   : > { %425 = vrot.lane.b32.xlu2 %v1421_v16, %s1602_s16  ;;  %v1435_v17 = vld [vmem:[%s1695_s14 + $0x10] sm:$0xff]  ;;  %v1425_v18 = vld [vmem:[%s1695_s14 + $0x8] sm:$0xff]  ;;  %v1447_v23 = vld [vmem:[%s1965_s1 + $0x38] sm:$0xff] }
  0x30   : > { %v1426_v21 = vld [vmem:[%s1695_s14 + $0x10] sm:$0xff]  ;;  %v1455_v24 = vld [vmem:[%s1965_s1 + $0x78] sm:$0xff]  ;;  %732 = vmatpush.bf16.msra.mxu0 %v1447_v23  ;;  %1472 = vmatpush.bf16.msra.mxu2 %v1447_v23  ;;  %v1438_v29 = vld [vmem:[%s1695_s14 + $0x28] sm:$0xff] }
  0x31   : > { %v1431_v22 = vld [vmem:[%s1695_s14 + $0x14] sm:$0xff]  ;;  %766 = vmatpush.bf16.msra.mxu1 %v1455_v24  ;;  %v1433_v28 = vld [vmem:[%s1695_s14 + $0x24] sm:$0xff]  ;;  %1480 = vmatpush.bf16.msra.mxu3 %v1455_v24  ;;  %v1432_v41 = vld [vmem:[%s1695_s14 + $0x1c] sm:$0xff] }
  0x32   : > { %v1446_v25 = vld [vmem:[%s1965_s1 + $0x30] sm:$0xff]  ;;  %v1445_v30 = vld [vmem:[%s1965_s1 + $0x28] sm:$0xff]  ;;  %v1444_v32 = vld [vmem:[%s1965_s1 + $0x20] sm:$0xff] }
  0x33   : > { %v1454_v26 = vld [vmem:[%s1965_s1 + $0x70] sm:$0xff]  ;;  %v1453_v31 = vld [vmem:[%s1965_s1 + $0x68] sm:$0xff]  ;;  %v1452_v33 = vld [vmem:[%s1965_s1 + $0x60] sm:$0xff] }
  0x34   : > { %v1436_v27 = vld [vmem:[%s1695_s14 + $0x18] sm:$0xff]  ;;  %733 = vmatpush.bf16.msra.mxu0 %v1446_v25  ;;  %1473 = vmatpush.bf16.msra.mxu2 %v1446_v25  ;;  %v1424_v34 = vld [vmem:[%s1695_s14 + $0x24] sm:$0xff]  ;;  %v1434_v43 = vld [vmem:[%s1695_s14 + $0x2c] sm:$0xff] }
  0x35   : > { %767 = vmatpush.bf16.msra.mxu1 %v1454_v26  ;;  %1481 = vmatpush.bf16.msra.mxu3 %v1454_v26  ;;  %v1422_v35 = vld [vmem:[%s1695_s14 + $0x14] sm:$0xff]  ;;  %v1429_v42 = vld [vmem:[%s1695_s14 + $0x28] sm:$0xff]  ;;  %v1437_v45 = vld [vmem:[%s1695_s14 + $0x20] sm:$0xff] }
  0x36   : > { %528 = vrot.lane.b32.xlu1 %v1435_v17, %s1603_s17  ;;  %458 = vrot.lane.b32.xlu0 %v1425_v18, %s1604_s23  ;;  %v1427_v36 = vld [vmem:[%s1695_s14 + $0x18] sm:$0xff]  ;;  %v1439_v44 = vld [vmem:[%s1695_s14 + $0x30] sm:$0xff] }
  0x37   : > { %429 = vrot.lane.b32.xlu2 %v1423_v19, %s1602_s16  ;;  %v1443_v37 = vld [vmem:[%s1965_s1 + $0x18] sm:$0xff]  ;;  %v1442_v39 = vld [vmem:[%s1965_s1 + $0x10] sm:$0xff]  ;;  %v1441_v46 = vld [vmem:[%s1965_s1 + $0x8] sm:$0xff] }
  0x38   : > { %734 = vmatpush.bf16.msra.mxu0 %v1445_v30  ;;  %1474 = vmatpush.bf16.msra.mxu2 %v1445_v30  ;;  %v1451_v38 = vld [vmem:[%s1965_s1 + $0x58] sm:$0xff]  ;;  %v1450_v40 = vld [vmem:[%s1965_s1 + $0x50] sm:$0xff]  ;;  %v1449_v47 = vld [vmem:[%s1965_s1 + $0x48] sm:$0xff] }
  0x39   : > { %768 = vmatpush.bf16.msra.mxu1 %v1453_v31  ;;  %1482 = vmatpush.bf16.msra.mxu3 %v1453_v31  ;;  %v1440_v48 = vld [vmem:[%s1965_s1] sm:$0xff]  ;;  %v1418_v60 = vld [vmem:[%s1695_s14 + $0x18] sm:$0xff]  ;;  %v1417_v15 = vld [vmem:[%s1695_s14 + $0x10] sm:$0xff] }
  0x3a   : > { %v1448_v49 = vld [vmem:[%s1965_s1 + $0x40] sm:$0xff] }
  0x3b   : > { %v1415_v54 = vld [vmem:[%s1695_s14] sm:$0xff]  ;;  %v1416_v3 = vld [vmem:[%s1695_s14 + $0x8] sm:$0xff] }
  0x3c   : > { %735 = vmatpush.bf16.msra.mxu0 %v1444_v32  ;;  %1475 = vmatpush.bf16.msra.mxu2 %v1444_v32  ;;  %v1419_v17 = vld [vmem:[%s1695_s14 + $0x20] sm:$0xff]  ;;  %s1051_s14 = scalar_lea.sflag [#allocation4], %s1692_s12 }
  0x3d   : > { %769 = vmatpush.bf16.msra.mxu1 %v1452_v33  ;;  %1483 = vmatpush.bf16.msra.mxu3 %v1452_v33  ;;  %v1470_v33 = vld [vmem:[%s1967_s3 + $0x74] sm:$0xf] }
  0x3e   : > { %464 = vrot.lane.b32.xlu1 %v1428_v20, %s1604_s23  ;;  %460 = vrot.lane.b32.xlu0 %v1426_v21, %s1604_s23 }
  0x3f   : > { %495 = vrot.lane.b32.xlu2 %v1431_v22, %s1601_s15 }
  0x40   : > { %736 = vmatpush.bf16.msra.mxu0 %v1443_v37  ;;  %1476 = vmatpush.bf16.msra.mxu2 %v1443_v37 }
  0x41   : > { %770 = vmatpush.bf16.msra.mxu1 %v1451_v38  ;;  %1484 = vmatpush.bf16.msra.mxu3 %v1451_v38  ;;  %v1471_v38 = vld [vmem:[%s1967_s3 + $0x74] sm:$0xf0] }
  0x44   : > { %737 = vmatpush.bf16.msra.mxu0 %v1442_v39  ;;  %1477 = vmatpush.bf16.msra.mxu2 %v1442_v39 }
  0x45   : > { %771 = vmatpush.bf16.msra.mxu1 %v1450_v40  ;;  %1485 = vmatpush.bf16.msra.mxu3 %v1450_v40  ;;  %v1468_v40 = vld [vmem:[%s1967_s3 + $0x64] sm:$0xf] }
  0x46   : > { %530 = vrot.lane.b32.xlu1 %v1436_v27, %s1603_s17  ;;  %499 = vrot.lane.b32.xlu0 %v1433_v28, %s1601_s15 }
  0x47   : > { %534 = vrot.lane.b32.xlu2 %v1438_v29, %s1603_s17 }
  0x48   : > { %738 = vmatpush.bf16.msra.mxu0 %v1441_v46  ;;  %1478 = vmatpush.bf16.msra.mxu2 %v1441_v46 }
  0x49   : > { %772 = vmatpush.bf16.msra.mxu1 %v1449_v47  ;;  %1486 = vmatpush.bf16.msra.mxu3 %v1449_v47  ;;  %v1466_v47 = vld [vmem:[%s1967_s3 + $0x54] sm:$0xf] }
  0x4c   : > { %739 = vmatpush.bf16.msra.mxu0 %v1440_v48  ;;  %1479 = vmatpush.bf16.msra.mxu2 %v1440_v48  ;;  %v1390_v48 = vld [vmem:[%s1967_s3 + $0x58] sm:$0xf0] }
  0x4d   : > { %773 = vmatpush.bf16.msra.mxu1 %v1448_v49  ;;  %1487 = vmatpush.bf16.msra.mxu3 %v1448_v49  ;;  %v1388_v49 = vld [vmem:[%s1967_s3 + $0x50] sm:$0xf] }
  0x4e   : > { %431 = vrot.lane.b32.xlu1 %v1424_v34, %s1602_s16  ;;  %427 = vrot.lane.b32.xlu0 %v1422_v35, %s1602_s16  ;;  %v1406_v34 = vld [vmem:[%s1967_s3 + $0x78] sm:$0xf0]  ;;  %v1404_v35 = vld [vmem:[%s1967_s3 + $0x70] sm:$0xf] }
  0x4f   : > { %462 = vrot.lane.b32.xlu2 %v1427_v36, %s1604_s23  ;;  %v1409_v37 = vor.u32 %v1470_v33, %v1406_v34  ;;  %v1405_v39 = vor.u32 %v1471_v38, %v1404_v35 }
  0x51   : > { %1011 = vmatpush.bf16.msrb.mxu3 %v1409_v37  ;;  %998 = vmatpush.bf16.msrb.mxu2 %v1405_v39 }
  0x56   : > { %497 = vrot.lane.b32.xlu1 %v1432_v41, %s1601_s15  ;;  %466 = vrot.lane.b32.xlu0 %v1429_v42, %s1604_s23  ;;  %v1398_v41 = vld [vmem:[%s1967_s3 + $0x68] sm:$0xf0]  ;;  %v1396_v42 = vld [vmem:[%s1967_s3 + $0x60] sm:$0xf] }
  0x57   : > { %501 = vrot.lane.b32.xlu2 %v1434_v43, %s1601_s15  ;;  %s317_s15 = scalar_lea.vmem [#allocation3], %s1136_s7 }
  0x58   : > { %s1063_s11 = sshll.u32 %s317_s15, 4  ;;  %s1064_s11 = int_to_ptr.vmem [resolvable:$true] %s1063_s11 }
  0x5e   : > { %536 = vrot.lane.b32.xlu1 %v1439_v44, %s1603_s17  ;;  %532 = vrot.lane.b32.xlu0 %v1437_v45, %s1603_s17  ;;  %v1401_v44 = vor.u32 %v1468_v40, %v1398_v41  ;;  %v1469_v45 = vld [vmem:[%s1967_s3 + $0x64] sm:$0xf0]  ;;  %s1551_s17 = sshra.s32 %s1066_s22, 4  ;;  %s1552_s17 = int_to_ptr.hbm [resolvable:$true] %s1551_s17 }
  0x5f   : > { %v1397_v46 = vor.u32 %v1469_v45, %v1396_v42  ;;  %s1553_s13 = scalar_lea.hbm %s1552_s17, 8  ;;  %p1558_p2 = scmp.lt.s32.totalorder %s1552_s17, %s1969_s5 }
  0x60   : > { %1012 = vmatpush.bf16.msrb.mxu3 %v1401_v44  ;;  %p1554_p13 = scmp.ne.s32.totalorder %s1552_s17, %s1553_s13  ;;  %p1559_p3 = scmp.lt.s32.totalorder %s1557_s30, %s1553_s13 }
  0x61   : > { %999 = vmatpush.bf16.msrb.mxu2 %v1397_v46 }
  0x62   : > { %p1555_p0 = pnand %p1554_p13, %p1673_p6  ;;  %p1560_p4 = por %p1559_p3, %p1558_p2 }
  0x64   : > { %p1556_p1 = pneg %p1555_p0 }
  0x66   : > { %p1561_p5 = pnand %p1560_p4, %p1556_p1 }
  0x89   : > { %v426_v50 = vpop.permute.xlu2 %425 }
  0x8a   : > { %v544_v5 = vsel %vm538_vm0, %v1416_v3, %v426_v50  ;;  %v1393_v50 = vor.u32 %v1466_v47, %v1390_v48 }
  0x8c   : > { %1013 = vmatpush.bf16.msrb.mxu3 %v1393_v50 }
  0x91   : > { %v430_v53 = vpop.permute.xlu2 %429 }
  0x92   : > { %v550_v63 = vsel %vm538_vm0, %v1418_v60, %v430_v53 }
  0x99   : > { %v496_v62 = vpop.permute.xlu2 %495 }
  0xa0   : > { %v494_v51 = vpop.permute.xlu1 %493  ;;  %v424_v52 = vpop.permute.xlu0 %423 }
  0xa1   : > { %v541_v55 = vsel %vm538_vm0, %v1415_v54, %v424_v52  ;;  %v535_v4 = vpop.permute.xlu2 %534  ;;  %v1464_v54 = vld [vmem:[%s1967_s3 + $0x44] sm:$0xf] }
  0xa8   : > { %v529_v56 = vpop.permute.xlu1 %528  ;;  %v459_v57 = vpop.permute.xlu0 %458 }
  0xa9   : > { %v572_v58 = vsel %vm570_vm1, %v459_v57, %v494_v51  ;;  %v556_v59 = vsel %vm554_vm2, %v541_v55, %v459_v57  ;;  %v463_v16 = vpop.permute.xlu2 %462  ;;  %v1467_v51 = vld [vmem:[%s1967_s3 + $0x54] sm:$0xf0]  ;;  %v1382_v55 = vld [vmem:[%s1967_s3 + $0x48] sm:$0xf0] }
  0xaa   : > { %740 = vmatmul.bf16.vlgmr.msra.gmra.mxu0 %v556_v59  ;;  %v583_v61 = vsel %vm581_vm3, %v572_v58, %v529_v56  ;;  %v1389_v52 = vor.u32 %v1467_v51, %v1388_v49  ;;  %v1380_v56 = vld [vmem:[%s1967_s3 + $0x40] sm:$0xf]  ;;  %v1385_v57 = vor.u32 %v1464_v54, %v1382_v55  ;;  %v1465_v58 = vld [vmem:[%s1967_s3 + $0x44] sm:$0xf0] }
  0xab   : > { %1341 = vmatmul.msk.bf16.vlgmr.msra.gmra.mxu1 %vm592_vm4, %v583_v61  ;;  %v1381_v59 = vor.u32 %v1465_v58, %v1380_v56  ;;  %v1462_v61 = vld [vmem:[%s1967_s3 + $0x34] sm:$0xf] }
  0xac   : > { %1000 = vmatpush.bf16.msrb.mxu2 %v1389_v52  ;;  %1014 = vmatpush.bf16.msrb.mxu3 %v1385_v57 }
  0xb0   : > { %v465_v0 = vpop.permute.xlu1 %464  ;;  %v461_v1 = vpop.permute.xlu0 %460  ;;  %1001 = vmatpush.bf16.msrb.mxu2 %v1381_v59 }
  0xb1   : > { %v565_v2 = vsel %vm554_vm2, %v550_v63, %v465_v0  ;;  %v574_v6 = vsel %vm570_vm1, %v461_v1, %v496_v62  ;;  %v559_v10 = vsel %vm554_vm2, %v544_v5, %v461_v1  ;;  %v502_v24 = vpop.permute.xlu2 %501  ;;  %v1374_v62 = vld [vmem:[%s1967_s3 + $0x38] sm:$0xf0]  ;;  %v1372_v63 = vld [vmem:[%s1967_s3 + $0x30] sm:$0xf]  ;;  %v1463_v1 = vld [vmem:[%s1967_s3 + $0x34] sm:$0xf0] }
  0xb2   : > { %755 = vmatmul.bf16.vlgmr.msra.gmra.mxu2 %v565_v2  ;;  %v1373_v2 = vor.u32 %v1463_v1, %v1372_v63  ;;  %v1366_v5 = vld [vmem:[%s1967_s3 + $0x28] sm:$0xf0] }
  0xb4   : > { %1002 = vmatpush.bf16.msrb.mxu2 %v1373_v2 }
  0xb8   : > { %v531_v7 = vpop.permute.xlu1 %530  ;;  %v500_v8 = vpop.permute.xlu0 %499 }
  0xb9   : > { %v578_v9 = vsel %vm570_vm1, %v465_v0, %v500_v8  ;;  %v585_v11 = vsel %vm581_vm3, %v574_v6, %v531_v7  ;;  %v1377_v0 = vor.u32 %v1462_v61, %v1374_v62  ;;  %v1364_v6 = vld [vmem:[%s1967_s3 + $0x20] sm:$0xf] }
  0xba   : > { %745 = vmatmul.bf16.gmra.mxu0 %v559_v10  ;;  %v589_v12 = vsel %vm581_vm3, %v578_v9, %v535_v4  ;;  %v1460_v4 = vld [vmem:[%s1967_s3 + $0x24] sm:$0xf]  ;;  %v1461_v10 = vld [vmem:[%s1967_s3 + $0x24] sm:$0xf0] }
  0xbb   : > { %1342 = vmatmul.msk.bf16.gmra.mxu1 %vm592_vm4, %v585_v11  ;;  %1344 = vmatmul.msk.bf16.vlgmr.msra.gmra.mxu3 %vm592_vm4, %v589_v12  ;;  %v1369_v9 = vor.u32 %v1460_v4, %v1366_v5  ;;  %v1365_v11 = vor.u32 %v1461_v10, %v1364_v6  ;;  %v810_v12 = vld [vmem:[%s1966_s2] sm:$0x1] }
  0xbc   : > { %1015 = vmatpush.bf16.msrb.mxu3 %v1377_v0 }
  0xbd   : > { %1003 = vmatpush.bf16.msrb.mxu2 %v1365_v11 }
  0xc0   : > { %v432_v13 = vpop.permute.xlu1 %431  ;;  %v428_v14 = vpop.permute.xlu0 %427  ;;  %1016 = vmatpush.bf16.msrb.mxu3 %v1369_v9 }
  0xc1   : > { %v547_v18 = vsel %vm538_vm0, %v1417_v15, %v428_v14  ;;  %v553_v19 = vsel %vm538_vm0, %v1419_v17, %v432_v13  ;;  %v1458_v13 = vld [vmem:[%s1967_s3 + $0x14] sm:$0xf]  ;;  %v1358_v14 = vld [vmem:[%s1967_s3 + $0x18] sm:$0xf0]  ;;  %v1356_v15 = vld [vmem:[%s1967_s3 + $0x10] sm:$0xf] }
  0xc2   : > { %v562_v22 = vsel %vm554_vm2, %v547_v18, %v463_v16  ;;  %v1361_v17 = vor.u32 %v1458_v13, %v1358_v14  ;;  %v1459_v18 = vld [vmem:[%s1967_s3 + $0x14] sm:$0xf0] }
  0xc4   : > { %1017 = vmatpush.bf16.msrb.mxu3 %v1361_v17 }
  0xc8   : > { %v498_v20 = vpop.permute.xlu1 %497  ;;  %v467_v21 = vpop.permute.xlu0 %466 }
  0xc9   : > { %v568_v23 = vsel %vm554_vm2, %v553_v19, %v467_v21  ;;  %v576_v25 = vsel %vm570_vm1, %v463_v16, %v498_v20  ;;  %v580_v26 = vsel %vm570_vm1, %v467_v21, %v502_v24  ;;  %v1357_v19 = vor.u32 %v1459_v18, %v1356_v15  ;;  %v1456_v20 = vld [vmem:[%s1967_s3 + $0x4] sm:$0xf]  ;;  %v1350_v21 = vld [vmem:[%s1967_s3 + $0x8] sm:$0xf0] }
  0xca   : > { %750 = vmatmul.bf16.gmra.mxu0 %v562_v22  ;;  %760 = vmatmul.bf16.gmra.mxu2 %v568_v23  ;;  %v1348_v22 = vld [vmem:[%s1967_s3] sm:$0xf]  ;;  %v812_v24 = vpack.i.b16 %v810_v12, %v810_v12 }
  0xcb   : > { %1004 = vmatpush.bf16.msrb.mxu2 %v1357_v19 }
  0xcc   : > { %v814_v33 = vperm.slane %v812_v24, 0 }
  0xce   : > { %v825_v39 = vunpack.c.l.bf16 %v814_v33 }
  0xd0   : > { %v537_v27 = vpop.permute.xlu1 %536  ;;  %v533_v28 = vpop.permute.xlu0 %532 }
  0xd1   : > { %v587_v29 = vsel %vm581_vm3, %v576_v25, %v533_v28  ;;  %v591_v30 = vsel %vm581_vm3, %v580_v26, %v537_v27  ;;  %v1353_v25 = vor.u32 %v1456_v20, %v1350_v21  ;;  %v1457_v26 = vld [vmem:[%s1967_s3 + $0x4] sm:$0xf0] }
  0xd2   : > { %1343 = vmatmul.msk.bf16.gmra.mxu1 %vm592_vm4, %v587_v29  ;;  %1345 = vmatmul.msk.bf16.gmra.mxu3 %vm592_vm4, %v591_v30  ;;  %v1349_v27 = vor.u32 %v1457_v26, %v1348_v22 }
  0xd3   : > { %1018 = vmatpush.bf16.msrb.mxu3 %v1353_v25 }
  0xd4   : > { %1005 = vmatpush.bf16.msrb.mxu2 %v1349_v27 }
 0x127   : > { %v1815_v31 = vpop.f32.mrf.mxu0 }
 0x128   : > { %v1817_v32 = vpop.f32.mrf.mxu1 }
 0x129   : > { %v776_v23 = vadd.f32 %v1817_v32, %v1815_v31 }
 0x12b   : > { %v800_v30 = vpack.c.bf16 %v776_v23, %v776_v23 }
 0x12d   : > { %v815_v38 = vunpack.c.l.bf16 %v800_v30 }
 0x12f   : > { %v1828_v36 = vpop.f32.mrf.mxu0 }
 0x130   : > { %v777_v43 = vpop.f32.mrf.mxu1 }
 0x131   : > { %v778_v28 = vadd.f32 %v777_v43, %v1828_v36  ;;  %v826_v36 = vadd.f32 %v825_v39, %v815_v38 }
 0x133   : > { %v801_v37 = vpack.c.bf16 %v778_v28, %v778_v28  ;;  %v856_v62 = vmax.f32 %v826_v36, 0.0 }
 0x135   : > { %v756_v3 = vpop.f32.mrf.mxu2  ;;  %v816_v42 = vunpack.c.l.bf16 %v801_v37  ;;  %v866_v6 = vpack.c.bf16 %v856_v62, %v856_v62 }
 0x137   : > { %v1857_v53 = vpop.f32.mrf.mxu0  ;;  %v827_v52 = vadd.f32 %v825_v39, %v816_v42  ;;  %v876_v20 = vunpack.c.l.bf16 %v866_v6 }
 0x138   : > { %v780_v60 = vpop.f32.mrf.mxu1 }
 0x139   : > { %v781_v48 = vadd.f32 %v780_v60, %v1857_v53  ;;  %v857_v2 = vmax.f32 %v827_v52, 0.0 }
 0x13b   : > { %v802_v63 = vpack.c.bf16 %v781_v48, %v781_v48  ;;  %v867_v13 = vpack.c.bf16 %v857_v2, %v857_v2 }
 0x13d   : > { %v758_v29 = vpop.f32.mrf.mxu2  ;;  %v817_v9 = vunpack.c.l.bf16 %v802_v63  ;;  %v877_v25 = vunpack.c.l.bf16 %v867_v13 }
 0x13e   : > { %v790_v7 = vpop.f32.mrf.mxu3 }
 0x13f   : > { %v748_v8 = vpop.f32.mrf.mxu0  ;;  %v791_v44 = vadd.f32 %v790_v7, %v756_v3  ;;  %v828_v21 = vadd.f32 %v825_v39, %v817_v9 }
 0x140   : > { %v782_v16 = vpop.f32.mrf.mxu1 }
 0x141   : > { %v783_v45 = vadd.f32 %v782_v16, %v748_v8  ;;  %v806_v54 = vpack.c.bf16 %v791_v44, %v791_v44 }
 0x143   : > { %v803_v55 = vpack.c.bf16 %v783_v45, %v783_v45  ;;  %v821_v3 = vunpack.c.l.bf16 %v806_v54 }
 0x145   : > { %v818_v4 = vunpack.c.l.bf16 %v803_v55  ;;  %v832_v14 = vadd.f32 %v825_v39, %v821_v3 }
 0x146   : > { %v792_v34 = vpop.f32.mrf.mxu3 }
 0x147   : > { %v751_v35 = vpop.f32.mrf.mxu0  ;;  %v793_v40 = vadd.f32 %v792_v34, %v758_v29  ;;  %v829_v15 = vadd.f32 %v825_v39, %v818_v4  ;;  %v862_v26 = vmax.f32 %v832_v14, 0.0  ;;  %v858_v34 = vmax.f32 %v828_v21, 0.0 }
 0x149   : > { %v807_v49 = vpack.c.bf16 %v793_v40, %v793_v40  ;;  %v859_v27 = vmax.f32 %v829_v15, 0.0 }
 0x14b   : > { %v822_v0 = vunpack.c.l.bf16 %v807_v49 }
 0x14d   : > { %v761_v46 = vpop.f32.mrf.mxu2  ;;  %v833_v10 = vadd.f32 %v825_v39, %v822_v0 }
 0x14f   : > { %v785_v31 = vpop.f32.mrf.mxu1  ;;  %v753_v56 = vpop.f32.mrf.mxu0  ;;  %v863_v22 = vmax.f32 %v833_v10, 0.0 }
 0x150   : > { %v786_v32 = vadd.f32 %v785_v31, %v751_v35 }
 0x151   : > { %v889_v35 = vmax.f32 %v859_v27, %v863_v22 }
 0x152   : > { %v804_v41 = vpack.c.bf16 %v786_v32, %v786_v32  ;;  %v888_v32 = vmax.f32 %v858_v34, %v862_v26 }
 0x154   : > { %v819_v47 = vunpack.c.l.bf16 %v804_v41  ;;  %v893_v42 = vmax.f32 %v888_v32, %v889_v35 }
 0x155   : > { %v795_v43 = vpop.f32.mrf.mxu3  ;;  %v763_v7 = vpop.f32.mrf.mxu2 }
 0x156   : > { %v830_v50 = vadd.f32 %v825_v39, %v819_v47  ;;  %v796_v51 = vadd.f32 %v795_v43, %v761_v46  ;;  %v912_v46 = vld [vmem:[%s1968_s4] sm:$0x3] }
 0x157   : > { %v787_v57 = vpop.f32.mrf.mxu1  ;;  %v915_v47 = vperm.slane %v912_v46, 1 }
 0x158   : > { %v860_v58 = vmax.f32 %v830_v50, 0.0  ;;  %v808_v59 = vpack.c.bf16 %v796_v51, %v796_v51  ;;  %v788_v61 = vadd.f32 %v787_v57, %v753_v56  ;;  %v914_v56 = vperm.slane %v912_v46, 0 }
 0x15a   : > { %v805_v1 = vpack.c.bf16 %v788_v61, %v788_v61  ;;  %v870_v5 = vpack.c.bf16 %v860_v58, %v860_v58  ;;  %v823_v53 = vunpack.c.l.bf16 %v808_v59 }
 0x15c   : > { %v820_v60 = vunpack.c.l.bf16 %v805_v1  ;;  %v880_v16 = vunpack.c.l.bf16 %v870_v5  ;;  %v834_v17 = vadd.f32 %v825_v39, %v823_v53 }
 0x15d   : > { %v797_v8 = vpop.f32.mrf.mxu3 }
 0x15e   : > { %v831_v11 = vadd.f32 %v825_v39, %v820_v60  ;;  %v798_v12 = vadd.f32 %v797_v8, %v763_v7  ;;  %v886_v28 = vmax.f32 %v876_v20, %v880_v16  ;;  %v864_v29 = vmax.f32 %v834_v17, 0.0 }
 0x160   : > { %v861_v18 = vmax.f32 %v831_v11, 0.0  ;;  %v809_v19 = vpack.c.bf16 %v798_v12, %v798_v12  ;;  %v890_v38 = vmax.f32 %v886_v28, %v864_v29 }
 0x162   : > { %v871_v23 = vpack.c.bf16 %v861_v18, %v861_v18  ;;  %v824_v24 = vunpack.c.l.bf16 %v809_v19 }
 0x164   : > { %v881_v30 = vunpack.c.l.bf16 %v871_v23  ;;  %v835_v33 = vadd.f32 %v825_v39, %v824_v24 }
 0x166   : > { %v887_v37 = vmax.f32 %v877_v25, %v881_v30  ;;  %v865_v31 = vmax.f32 %v835_v33, 0.0 }
 0x168   : > { %v891_v40 = vmax.f32 %v887_v37, %v865_v31 }
 0x16a   : > { %v892_v41 = vmax.f32 %v890_v38, %v891_v40 }
 0x16c   : > { %v894_v44 = vmax.f32 %v892_v41, %v893_v42 }
 0x16e   : > { %v895_v45 = vpack.c.bf16 %v894_v44, %v894_v44 }
 0x170   : > { %1006 = vmatmul.bf16.vlgmr.msrb.gmra.mxu2 %v895_v45  ;;  %1019 = vmatmul.bf16.vlgmr.msrb.gmra.mxu3 %v895_v45  ;;  %v1046_v3 = vunpack.c.l.bf16 %v895_v45 }
 0x1f3   : > { %v1007_v36 = vpop.f32.mrf.mxu2  ;;  %v1020_v39 = vpop.f32.mrf.mxu3 }
 0x1f4   : > { %v1021_v43 = vadd.f32 %v1020_v39, %v915_v47  ;;  %v1008_v62 = vadd.f32 %v1007_v36, %v914_v56 }
 0x1f6   : > { %v1410_v48 = vmul.f32 -1.442695, %v1021_v43  ;;  %v1024_v4 = vmax.f32 %v1008_v62, 0.0 }
 0x1f8   : > { %1533 = vpow2.f32 %v1410_v48 }
 0x1fb   : > { %v1009_v49 = vpop.f32.mrf.mxu2  ;;  %v1022_v50 = vpop.f32.mrf.mxu3 }
 0x1fe   : > { %v1534_v51 = vpop.eup %1533 }
 0x1ff   : > { %v1028_v52 = vadd.f32 1.0, %v1534_v51 }
 0x201   : > { %1535 = vrcp.f32 %v1028_v52  ;;  %v1040_v58 = vand.u32 2147483648, %v1028_v52  ;;  %v1038_v61 = vand.u32 2147483647, %v1028_v52  ;;  %vm1034_vm6 = vweird.f32 %v1028_v52 }
 0x203   : > { %v1041_v0 = vor.u32 1.1754944e-38, %v1040_v58  ;;  %vm1039_vm8 = vcmp.eq.f32.partialorder %v1038_v61, 8.507059e+37 }
 0x207   : > { %v1536_v54 = vpop.eup %1535 }
 0x208   : > { %v1030_v55 = vmul.f32 %v1536_v54, %v1028_v52  ;;  %vm1035_vm5 = vweird.f32 %v1536_v54 }
 0x209   : > { %vm1036_vm7 = vmor %vm1034_vm6, %vm1035_vm5 }
 0x20a   : > { %v1031_v57 = vsub.f32 1.0, %v1030_v55 }
 0x20c   : > { %v1032_v59 = vmul.f32 %v1536_v54, %v1031_v57 }
 0x20e   : > { %v1033_v63 = vadd.f32 %v1536_v54, %v1032_v59 }
 0x210   : > { %v1037_v1 = vsel %vm1036_vm7, %v1536_v54, %v1033_v63 }
 0x211   : > { %v1042_v2 = vsel %vm1039_vm8, %v1041_v0, %v1037_v1 }
 0x212   : > { %v1045_v5 = vsub.f32 1.0, %v1042_v2  ;;  %v1044_v53 = vmul.f32 %v1042_v2, %v1024_v4 }
 0x214   : > { %v1047_v60 = vmul.f32 %v1046_v3, %v1045_v5 }
 0x216   : > { %v1048_v6 = vadd.f32 %v1047_v60, %v1044_v53 }
 0x218   : > { %1049 = vst [vmem:[%s317_s15] sm:$0xff] %v1048_v6 }
 0x219   : > { %1564 = shalt.err (!%p1561_p5)
}
 0x21a   : > { %1490 = dma.vmem_to_hbm [thread:$0]  (%p1673_p6), %s1064_s11, 128, %s1066_s22, %s1051_s14  }
 0x21b PF: > { %s1077_s12 = sand.u32 1, %s1587_s18   ;;  %p1493_p7 = pnand %p1133_p9, %p1677_p8 }
 0x21c   : > { %s1078_s7 = scalar_lea.sflag [#allocation4], %s1077_s12 }
 0x21d   : > { %p1494_p10 = pneg %p1493_p7 }
 0x21f   : > { %1582 = dma.done.wait (%p1494_p10), %s1078_s7, 128  }
 0x220   : > { %1584 = vsyncadd (%p1494_p10), %s1078_s7, 4294967168  ;;  %p15_p11 = scmp.ge.s32.totalorder %s1658_s24, 4   ;;  %s1972_s18 = smov %s1591_s19 }
 0x221   : > { %s1973_s19 = smov %s1595_s20  ;;  %s1974_s20 = smov %s1671_s27 }
 0x222   : > { %s1975_s21 = smov %s1658_s24  ;;  %17 = sbr.rel (!%p15_p11) target bundleno = 3 (0x3), region = 125 }
 0x227   :  { %1084 = vsyncpa [#allocation4], 1 }
 0x228   :  { %1086 = vsyncpa [#allocation4 + $0x1], 1 }

</bundles_post_ra>
